<compile_context>
chip_gen: v7x
topology: tpu7x:2x2x1
jax: 0.10.0
libtpu: 0.0.40
codegen_flags: <defaults>
</compile_context>

<pallas_src>
import jax
import jax.numpy as jnp
import numpy as np
from jax import lax
from jax.experimental import pallas as pl
from jax.experimental.pallas import tpu as pltpu

# Small, module-consistent sizes.
B, T = 2, 8            # batch, sequence length
D = 32                 # encoder_dim
F = 32                 # duration_predictor_filter_size
K = 3                  # duration_predictor_kernel_size (padding=1 -> "same")
NUM_BINS = 255
EMB_ROWS = 256
EPS = 1e-5             # nn.LayerNorm default eps
PARAM = 1.0            # `param` argument of VarianceAdaptor.forward


def variance_adaptor_kernel(x_ref, masks_ref, w12_ref, vecs_ref,
                            bins_ref, emb_ref, out_ref):
    x = x_ref[...]                       # (B*T, D) folded batch
    bt, dn = x.shape

    masks = masks_ref[...]               # (B*T, 2)
    nf = masks[:, 0:1]                   # 0 at the first row of each sequence
    nl = masks[:, 1:2]                   # 0 at the last row of each sequence

    w12 = w12_ref[...]                   # (3*D + 3*F, F): both conv weights stacked
    w1m = w12[:3 * dn, :]                # (3*D, F)
    w2m = w12[3 * dn:, :]                # (3*F, F)

    vecs = vecs_ref[...]                 # (8, F): packed small parameters
    b1, g1, be1 = vecs[0:1], vecs[1:2], vecs[2:3]
    b2, g2, be2 = vecs[3:4], vecs[4:5], vecs[5:6]
    wl_row = vecs[6:7]                   # (1, F) linear-layer weight (row form)
    bl = vecs[7:8, 0:1]                  # (1, 1) linear-layer bias

    def conv3(h, w, b):
        # "same"-padded kernel-3 conv as ONE matmul over a lane-concatenated
        # [h[t-1], h[t], h[t+1]] block; rolls run on the XLU (non-negative
        # shifts only), masks kill the circular wrap and cross-sequence leak.
        h_prev = pltpu.roll(h, 1, 0) * nf            # h[t-1]
        h_next = pltpu.roll(h, bt - 1, 0) * nl       # h[t+1]  (== shift -1)
        taps = jnp.concatenate([h_prev, h, h_next], axis=-1)   # (B*T, 3*Cin)
        return jnp.dot(taps, w, preferred_element_type=jnp.float32) + b

    def layer_norm(h, g, be):
        mu = jnp.mean(h, axis=-1, keepdims=True)
        var = jnp.mean((h - mu) ** 2, axis=-1, keepdims=True)
        return (h - mu) * lax.rsqrt(var + EPS) * g + be

    # conv_net: Conv1d -> LayerNorm -> ReLU (Dropout = identity at inference), x2
    h = jnp.maximum(layer_norm(conv3(x, w1m, b1), g1, be1), 0.0)
    h = jnp.maximum(layer_norm(conv3(h, w2m, b2), g2, be2), 0.0)

    # linear_layer (F -> 1) + ReLU as VPU mul + lane reduction (avoids N=1 matmul)
    pred = jnp.sum(h * wl_row, axis=-1, keepdims=True) + bl      # (B*T, 1)
    pred = jnp.maximum(pred, 0.0)

    # torch.bucketize(param * pred, bins): count of boundaries strictly < value.
    # bins_ref is (1, 256): 255 real boundaries + one +inf pad lane.
    scaled = PARAM * pred                                        # (B*T, 1)
    idx = jnp.sum((bins_ref[...] < scaled).astype(jnp.int32),
                  axis=-1, keepdims=True)                        # (B*T, 1)

    # nn.Embedding(256, D) lookup as one-hot matmul on the MXU.
    lane = lax.broadcasted_iota(jnp.int32, (bt, EMB_ROWS), 1)
    one_hot = (lane == idx).astype(jnp.float32)                  # (B*T, 256)
    out_ref[...] = jnp.dot(one_hot, emb_ref[...],
                           preferred_element_type=jnp.float32)   # (B*T, D)


def variance_adaptor(x, params):
    """x: (B, T, D) float32.  Returns embedding (1, B, T, D) (eval-mode semantics)."""
    (w1, b1, g1, be1, w2, b2, g2, be2, wl, bl, bins, emb) = params
    bn, tn, dn = x.shape
    bt = bn * tn
    fs = w1.shape[2]

    # Fold the batch into the sublane axis.
    x2d = x.reshape(bt, dn)

    # Fuse the conv taps into one weight matrix per conv, and stack both conv
    # weights along sublanes so they arrive as a single VMEM operand.
    w1f = w1.reshape(w1.shape[0] * w1.shape[1], w1.shape[2])   # (3*D, F)
    w2f = w2.reshape(w2.shape[0] * w2.shape[1], w2.shape[2])   # (3*F, F)
    w12 = jnp.concatenate([w1f, w2f], axis=0)                  # (3*D + 3*F, F)

    # Pack all the tiny per-channel vectors + the linear layer into one (8, F) slab.
    bl_row = jnp.concatenate([bl, jnp.zeros((1, fs - 1), jnp.float32)], axis=1)
    vecs = jnp.concatenate([b1, g1, be1, b2, g2, be2, wl.T, bl_row], axis=0)

    # Host-precomputed sequence-boundary masks for the folded batch.
    pos = np.arange(bt) % tn
    masks = jnp.asarray(
        np.stack([(pos != 0), (pos != tn - 1)], axis=1).astype(np.float32))  # (B*T, 2)

    # No grid: whole problem in one step, every operand a single resident
    # full-array VMEM block (no pipelining / double-buffering bookkeeping).
    out2d = pl.pallas_call(
        variance_adaptor_kernel,
        out_shape=jax.ShapeDtypeStruct((bt, dn), jnp.float32),
    )(x2d, masks, w12, vecs, bins, emb)

    # VariancePredictor in eval mode does .squeeze().unsqueeze(0) -> (1, B, T);
    # the embedding of that is (1, B, T, D).
    return out2d.reshape(bn, tn, dn)[None]


def reference(x, params):
    (w1, b1, g1, be1, w2, b2, g2, be2, wl, bl, bins, emb) = params

    def conv(h, w, b):
        hp = jnp.pad(h, ((0, 0), (1, 1), (0, 0)))
        return hp[:, :-2] @ w[0] + hp[:, 1:-1] @ w[1] + hp[:, 2:] @ w[2] + b

    def ln(h, g, be):
        mu = h.mean(-1, keepdims=True)
        var = ((h - mu) ** 2).mean(-1, keepdims=True)
        return (h - mu) * lax.rsqrt(var + EPS) * g + be

    h = jax.nn.relu(ln(conv(x, w1, b1), g1, be1))
    h = jax.nn.relu(ln(conv(h, w2, b2), g2, be2))
    pred = jax.nn.relu(h @ wl + bl)                      # (B, T, 1)
    scaled = PARAM * pred
    idx = jnp.sum((bins[None] < scaled).astype(jnp.int32), axis=-1)  # (B, T)
    return emb[idx][None]                                # (1, B, T, D)


def init_params(key):
    ks = jax.random.split(key, 8)
    w1 = jax.random.normal(ks[0], (K, D, F), jnp.float32) / np.sqrt(K * D)
    b1 = jax.random.normal(ks[1], (1, F), jnp.float32) * 0.1
    g1 = 1.0 + 0.1 * jax.random.normal(ks[2], (1, F), jnp.float32)
    be1 = 0.1 * jax.random.normal(ks[3], (1, F), jnp.float32)
    w2 = jax.random.normal(ks[4], (K, F, F), jnp.float32) / np.sqrt(K * F)
    b2 = jax.random.normal(ks[5], (1, F), jnp.float32) * 0.1
    g2 = 1.0 + 0.1 * jax.random.normal(ks[6], (1, F), jnp.float32)
    be2 = 0.1 * jax.random.normal(ks[7], (1, F), jnp.float32)
    kl, kb, ke = jax.random.split(jax.random.fold_in(key, 17), 3)
    wl = jax.random.normal(kl, (F, 1), jnp.float32) / np.sqrt(F)
    bl = 0.1 * jnp.ones((1, 1), jnp.float32)
    # init_exp_bins(bin_min=0.0, bin_max=2.0): 255 boundaries, +inf pad lane.
    bins_core = jnp.exp(jnp.linspace(0.0, 2.0, NUM_BINS, dtype=jnp.float32))
    bins = jnp.concatenate([bins_core, jnp.array([jnp.inf], jnp.float32)])[None, :]
    emb = jax.random.normal(ke, (EMB_ROWS, D), jnp.float32)
    return (w1, b1, g1, be1, w2, b2, g2, be2, wl, bl, bins, emb)


if __name__ == "__main__":
    key = jax.random.PRNGKey(0)
    kx, kp = jax.random.split(key)
    x = jax.random.normal(kx, (B, T, D), jnp.float32)
    params = init_params(kp)

    out = variance_adaptor(x, params)
    out = jax.block_until_ready(out)

    ref = reference(x, params)
    assert out.shape == (1, B, T, D), out.shape
    np.testing.assert_allclose(np.asarray(out), np.asarray(ref), atol=1e-4, rtol=1e-4)
    print("KERNEL_OK")
</pallas_src>

<mosaic_0001>
module attributes {stable_mosaic.version = 11 : i64} {
  func.func @variance_adaptor_kernel(%arg0: memref<16x32xf32, #tpu.memory_space<vmem>>, %arg1: memref<16x2xf32, #tpu.memory_space<vmem>>, %arg2: memref<192x32xf32, #tpu.memory_space<vmem>>, %arg3: memref<8x32xf32, #tpu.memory_space<vmem>>, %arg4: memref<1x256xf32, #tpu.memory_space<vmem>>, %arg5: memref<256x32xf32, #tpu.memory_space<vmem>>, %arg6: memref<16x32xf32, #tpu.memory_space<vmem>>) attributes {dimension_semantics = [], scalar_prefetch = 0 : i64, scratch_operands = 0 : i64, tpu.core_type = #tpu.core_type<tc>} {
    %c0 = arith.constant 0 : index
    %c0_0 = arith.constant 0 : index
    %0 = vector.load %arg0[%c0, %c0_0] : memref<16x32xf32, #tpu.memory_space<vmem>>, vector<16x32xf32>
    %c0_1 = arith.constant 0 : index
    %c0_2 = arith.constant 0 : index
    %1 = vector.load %arg1[%c0_1, %c0_2] : memref<16x2xf32, #tpu.memory_space<vmem>>, vector<16x2xf32>
    %2 = vector.extract_strided_slice %1 {offsets = [0, 0], sizes = [16, 1], strides = [1, 1]} : vector<16x2xf32> to vector<16x1xf32>
    %3 = vector.extract_strided_slice %1 {offsets = [0, 1], sizes = [16, 1], strides = [1, 1]} : vector<16x2xf32> to vector<16x1xf32>
    %c0_3 = arith.constant 0 : index
    %c0_4 = arith.constant 0 : index
    %4 = vector.load %arg2[%c0_3, %c0_4] : memref<192x32xf32, #tpu.memory_space<vmem>>, vector<192x32xf32>
    %5 = vector.extract_strided_slice %4 {offsets = [0, 0], sizes = [96, 32], strides = [1, 1]} : vector<192x32xf32> to vector<96x32xf32>
    %6 = vector.extract_strided_slice %4 {offsets = [96, 0], sizes = [96, 32], strides = [1, 1]} : vector<192x32xf32> to vector<96x32xf32>
    %c0_5 = arith.constant 0 : index
    %c0_6 = arith.constant 0 : index
    %7 = vector.load %arg3[%c0_5, %c0_6] : memref<8x32xf32, #tpu.memory_space<vmem>>, vector<8x32xf32>
    %8 = vector.extract_strided_slice %7 {offsets = [0, 0], sizes = [1, 32], strides = [1, 1]} : vector<8x32xf32> to vector<1x32xf32>
    %9 = vector.extract_strided_slice %7 {offsets = [1, 0], sizes = [1, 32], strides = [1, 1]} : vector<8x32xf32> to vector<1x32xf32>
    %10 = vector.extract_strided_slice %7 {offsets = [2, 0], sizes = [1, 32], strides = [1, 1]} : vector<8x32xf32> to vector<1x32xf32>
    %11 = vector.extract_strided_slice %7 {offsets = [3, 0], sizes = [1, 32], strides = [1, 1]} : vector<8x32xf32> to vector<1x32xf32>
    %12 = vector.extract_strided_slice %7 {offsets = [4, 0], sizes = [1, 32], strides = [1, 1]} : vector<8x32xf32> to vector<1x32xf32>
    %13 = vector.extract_strided_slice %7 {offsets = [5, 0], sizes = [1, 32], strides = [1, 1]} : vector<8x32xf32> to vector<1x32xf32>
    %14 = vector.extract_strided_slice %7 {offsets = [6, 0], sizes = [1, 32], strides = [1, 1]} : vector<8x32xf32> to vector<1x32xf32>
    %15 = vector.extract_strided_slice %7 {offsets = [7, 0], sizes = [1, 1], strides = [1, 1]} : vector<8x32xf32> to vector<1x1xf32>
    %c1_i32 = arith.constant 1 : i32
    %16 = tpu.dynamic_rotate %0 by %c1_i32 dim 0 : vector<16x32xf32>, i32 -> vector<16x32xf32>
    %17 = vector.broadcast %2 : vector<16x1xf32> to vector<16x32xf32>
    %18 = arith.mulf %16, %17 : vector<16x32xf32>
    %c15_i32 = arith.constant 15 : i32
    %19 = tpu.dynamic_rotate %0 by %c15_i32 dim 0 : vector<16x32xf32>, i32 -> vector<16x32xf32>
    %20 = vector.broadcast %3 : vector<16x1xf32> to vector<16x32xf32>
    %21 = arith.mulf %19, %20 : vector<16x32xf32>
    %22 = tpu.concatenate %18, %0, %21 in 1 : vector<16x32xf32>, vector<16x32xf32>, vector<16x32xf32> -> vector<16x96xf32>
    %cst = arith.constant dense<0.000000e+00> : vector<16x32xf32>
    %23 = tpu.matmul %22, %5, %cst {dimension_numbers = #tpu.dot_dimension_numbers<[1], [0], [0], [1], [0, 0, 1, 1], [], []>} : vector<16x96xf32>, vector<96x32xf32>, vector<16x32xf32> -> vector<16x32xf32>
    %24 = vector.broadcast %8 : vector<1x32xf32> to vector<16x32xf32>
    %25 = arith.addf %23, %24 : vector<16x32xf32>
    %cst_7 = arith.constant dense<0.000000e+00> : vector<16xf32>
    %26 = vector.multi_reduction <add>, %25, %cst_7 [1] : vector<16x32xf32> to vector<16xf32>
    %27 = vector.shape_cast %26 : vector<16xf32> to vector<16x1xf32>
    %cst_8 = arith.constant 3.200000e+01 : f32
    %28 = vector.broadcast %cst_8 : f32 to vector<16x1xf32>
    %29 = arith.divf %27, %28 : vector<16x1xf32>
    %30 = vector.broadcast %29 : vector<16x1xf32> to vector<16x32xf32>
    %31 = arith.subf %25, %30 : vector<16x32xf32>
    %32 = arith.mulf %31, %31 : vector<16x32xf32>
    %cst_9 = arith.constant dense<0.000000e+00> : vector<16xf32>
    %33 = vector.multi_reduction <add>, %32, %cst_9 [1] : vector<16x32xf32> to vector<16xf32>
    %34 = vector.shape_cast %33 : vector<16xf32> to vector<16x1xf32>
    %cst_10 = arith.constant 3.200000e+01 : f32
    %35 = vector.broadcast %cst_10 : f32 to vector<16x1xf32>
    %36 = arith.divf %34, %35 : vector<16x1xf32>
    %37 = vector.broadcast %29 : vector<16x1xf32> to vector<16x32xf32>
    %38 = arith.subf %25, %37 : vector<16x32xf32>
    %cst_11 = arith.constant 9.99999974E-6 : f32
    %39 = vector.broadcast %cst_11 : f32 to vector<16x1xf32>
    %40 = arith.addf %36, %39 : vector<16x1xf32>
    %41 = math.rsqrt %40 : vector<16x1xf32>
    %42 = vector.broadcast %41 : vector<16x1xf32> to vector<16x32xf32>
    %43 = arith.mulf %38, %42 : vector<16x32xf32>
    %44 = vector.broadcast %9 : vector<1x32xf32> to vector<16x32xf32>
    %45 = arith.mulf %43, %44 : vector<16x32xf32>
    %46 = vector.broadcast %10 : vector<1x32xf32> to vector<16x32xf32>
    %47 = arith.addf %45, %46 : vector<16x32xf32>
    %cst_12 = arith.constant 0.000000e+00 : f32
    %48 = vector.broadcast %cst_12 : f32 to vector<16x32xf32>
    %49 = arith.maximumf %47, %48 : vector<16x32xf32>
    %c1_i32_13 = arith.constant 1 : i32
    %50 = tpu.dynamic_rotate %49 by %c1_i32_13 dim 0 : vector<16x32xf32>, i32 -> vector<16x32xf32>
    %51 = vector.broadcast %2 : vector<16x1xf32> to vector<16x32xf32>
    %52 = arith.mulf %50, %51 : vector<16x32xf32>
    %c15_i32_14 = arith.constant 15 : i32
    %53 = tpu.dynamic_rotate %49 by %c15_i32_14 dim 0 : vector<16x32xf32>, i32 -> vector<16x32xf32>
    %54 = vector.broadcast %3 : vector<16x1xf32> to vector<16x32xf32>
    %55 = arith.mulf %53, %54 : vector<16x32xf32>
    %56 = tpu.concatenate %52, %49, %55 in 1 : vector<16x32xf32>, vector<16x32xf32>, vector<16x32xf32> -> vector<16x96xf32>
    %cst_15 = arith.constant dense<0.000000e+00> : vector<16x32xf32>
    %57 = tpu.matmul %56, %6, %cst_15 {dimension_numbers = #tpu.dot_dimension_numbers<[1], [0], [0], [1], [0, 0, 1, 1], [], []>} : vector<16x96xf32>, vector<96x32xf32>, vector<16x32xf32> -> vector<16x32xf32>
    %58 = vector.broadcast %11 : vector<1x32xf32> to vector<16x32xf32>
    %59 = arith.addf %57, %58 : vector<16x32xf32>
    %cst_16 = arith.constant dense<0.000000e+00> : vector<16xf32>
    %60 = vector.multi_reduction <add>, %59, %cst_16 [1] : vector<16x32xf32> to vector<16xf32>
    %61 = vector.shape_cast %60 : vector<16xf32> to vector<16x1xf32>
    %cst_17 = arith.constant 3.200000e+01 : f32
    %62 = vector.broadcast %cst_17 : f32 to vector<16x1xf32>
    %63 = arith.divf %61, %62 : vector<16x1xf32>
    %64 = vector.broadcast %63 : vector<16x1xf32> to vector<16x32xf32>
    %65 = arith.subf %59, %64 : vector<16x32xf32>
    %66 = arith.mulf %65, %65 : vector<16x32xf32>
    %cst_18 = arith.constant dense<0.000000e+00> : vector<16xf32>
    %67 = vector.multi_reduction <add>, %66, %cst_18 [1] : vector<16x32xf32> to vector<16xf32>
    %68 = vector.shape_cast %67 : vector<16xf32> to vector<16x1xf32>
    %cst_19 = arith.constant 3.200000e+01 : f32
    %69 = vector.broadcast %cst_19 : f32 to vector<16x1xf32>
    %70 = arith.divf %68, %69 : vector<16x1xf32>
    %71 = vector.broadcast %63 : vector<16x1xf32> to vector<16x32xf32>
    %72 = arith.subf %59, %71 : vector<16x32xf32>
    %cst_20 = arith.constant 9.99999974E-6 : f32
    %73 = vector.broadcast %cst_20 : f32 to vector<16x1xf32>
    %74 = arith.addf %70, %73 : vector<16x1xf32>
    %75 = math.rsqrt %74 : vector<16x1xf32>
    %76 = vector.broadcast %75 : vector<16x1xf32> to vector<16x32xf32>
    %77 = arith.mulf %72, %76 : vector<16x32xf32>
    %78 = vector.broadcast %12 : vector<1x32xf32> to vector<16x32xf32>
    %79 = arith.mulf %77, %78 : vector<16x32xf32>
    %80 = vector.broadcast %13 : vector<1x32xf32> to vector<16x32xf32>
    %81 = arith.addf %79, %80 : vector<16x32xf32>
    %cst_21 = arith.constant 0.000000e+00 : f32
    %82 = vector.broadcast %cst_21 : f32 to vector<16x32xf32>
    %83 = arith.maximumf %81, %82 : vector<16x32xf32>
    %84 = vector.broadcast %14 : vector<1x32xf32> to vector<16x32xf32>
    %85 = arith.mulf %83, %84 : vector<16x32xf32>
    %cst_22 = arith.constant dense<0.000000e+00> : vector<16xf32>
    %86 = vector.multi_reduction <add>, %85, %cst_22 [1] : vector<16x32xf32> to vector<16xf32>
    %87 = vector.shape_cast %86 : vector<16xf32> to vector<16x1xf32>
    %88 = vector.broadcast %15 : vector<1x1xf32> to vector<16x1xf32>
    %89 = arith.addf %87, %88 : vector<16x1xf32>
    %cst_23 = arith.constant 0.000000e+00 : f32
    %90 = vector.broadcast %cst_23 : f32 to vector<16x1xf32>
    %91 = arith.maximumf %89, %90 : vector<16x1xf32>
    %cst_24 = arith.constant 1.000000e+00 : f32
    %92 = vector.broadcast %cst_24 : f32 to vector<16x1xf32>
    %93 = arith.mulf %92, %91 : vector<16x1xf32>
    %c0_25 = arith.constant 0 : index
    %c0_26 = arith.constant 0 : index
    %94 = vector.load %arg4[%c0_25, %c0_26] : memref<1x256xf32, #tpu.memory_space<vmem>>, vector<1x256xf32>
    %95 = vector.broadcast %94 : vector<1x256xf32> to vector<16x256xf32>
    %96 = vector.broadcast %93 : vector<16x1xf32> to vector<16x256xf32>
    %97 = arith.cmpf olt, %95, %96 : vector<16x256xf32>
    %98 = arith.extui %97 : vector<16x256xi1> to vector<16x256xi32>
    %cst_27 = arith.constant dense<0> : vector<16xi32>
    %99 = vector.multi_reduction <add>, %98, %cst_27 [1] : vector<16x256xi32> to vector<16xi32>
    %100 = vector.shape_cast %99 : vector<16xi32> to vector<16x1xi32>
    %101 = tpu.iota {dimensions = array<i32: 1>} : vector<16x256xi32>
    %102 = vector.broadcast %100 : vector<16x1xi32> to vector<16x256xi32>
    %103 = arith.cmpi eq, %101, %102 : vector<16x256xi32>
    %104 = arith.extui %103 : vector<16x256xi1> to vector<16x256xi32>
    %105 = arith.sitofp %104 : vector<16x256xi32> to vector<16x256xf32>
    %c0_28 = arith.constant 0 : index
    %c0_29 = arith.constant 0 : index
    %106 = vector.load %arg5[%c0_28, %c0_29] : memref<256x32xf32, #tpu.memory_space<vmem>>, vector<256x32xf32>
    %cst_30 = arith.constant dense<0.000000e+00> : vector<16x32xf32>
    %107 = tpu.matmul %105, %106, %cst_30 {dimension_numbers = #tpu.dot_dimension_numbers<[1], [0], [0], [1], [0, 0, 1, 1], [], []>} : vector<16x256xf32>, vector<256x32xf32>, vector<16x32xf32> -> vector<16x32xf32>
    %c0_31 = arith.constant 0 : index
    %c0_32 = arith.constant 0 : index
    %108 = vector.load %arg6[%c0_31, %c0_32] : memref<16x32xf32, #tpu.memory_space<vmem>>, vector<16x32xf32>
    tpu.vector_store %arg6[%c0_31, %c0_32], %107 {strides = array<i32>} : memref<16x32xf32, #tpu.memory_space<vmem>>, vector<16x32xf32>,
    return
  }
}

</mosaic_0001>

<bundles_post_ra>
// kernel: tpu_custom_call.1
= control target key start
LH: loop header
LB: loop body
LE: loop exit
PB: predicated region body
PF: predicated region fallthrough
CT: control target
= control target key end

     0   :  { %v55_v2 = vlaneseq  ;;  %v864_v3 = vmov 1   ;;  %v865_v4 = vmov 0   ;;  %s1207_s0 = inlined_call_operand.vmem [shape: f32[16,32], index: 0, kind: input, shape index: {}]   ;;  %s1208_s1 = inlined_call_operand.vmem [shape: f32[16,2], index: 1, kind: input, shape index: {}]   ;;  %s1209_s2 = inlined_call_operand.vmem [shape: f32[192,32], index: 2, kind: input, shape index: {}]   ;;  %s1210_s3 = inlined_call_operand.vmem [shape: f32[8,32], index: 3, kind: input, shape index: {}]   ;;  %s1211_s4 = inlined_call_operand.vmem [shape: f32[1,256], index: 4, kind: input, shape index: {}]   ;;  %s1212_s5 = inlined_call_operand.vmem [shape: f32[256,32], index: 5, kind: input, shape index: {}]   ;;  %s1213_s6 = inlined_call_operand.hbm [shape: f32[16,32], index: 6, kind: output, shape index: {}]  }
   0x1   :  { %v26_v0 = vld [vmem:[%s1208_s1] sm:$0xff]  ;;  %v25_v1 = vld [vmem:[%s1207_s0 + $0x8] sm:$0xff]  ;;  %829 = vset.pattern.permute.xlu0 %v864_v3  ;;  %830 = vset.pattern.permute.xlu1 %v865_v4 }
   0x2   :  { %v73_v5 = vrot.slane %v25_v1, 1  ;;  %v24_v6 = vld [vmem:[%s1207_s0] sm:$0xff] }
   0x3   :  { %11 = vsyncpa [#allocation3], 0  ;;  %78 = vperm.xlu0 %829, %v26_v0   ;;  %62 = vperm.xlu1 %830, %v26_v0   ;;  %v72_v7 = vrot.slane %v24_v6, 1  ;;  %v918_v8 = vshrl.u32 %v55_v2, 7  ;;  %v27_v9 = vld [vmem:[%s1208_s1 + $0x8] sm:$0xff]  ;;  %v54_v10 = vrot.slane %v25_v1, 7 }
   0x4   :  { %v53_v11 = vrot.slane %v24_v6, 7  ;;  %v28_v14 = vld [vmem:[%s1209_s2] sm:$0xff]  ;;  %v29_v15 = vld [vmem:[%s1209_s2 + $0x8] sm:$0xff]  ;;  %v30_v16 = vld [vmem:[%s1209_s2 + $0x10] sm:$0xff]  ;;  %s866_s11 = smov 32   ;;  %s867_s28 = smov 64  }
   0x5   :  { %vm74_vm0 = vcmp.lt.s32.totalorder %v918_v8, 7  ;;  %vm57_vm1 = vcmp.lt.s32.totalorder %v918_v8, 1  ;;  %v741_v17 = vpack.c.bf16 %v29_v15, %v28_v14  ;;  %v31_v18 = vld [vmem:[%s1209_s2 + $0x18] sm:$0xff]  ;;  %v32_v22 = vld [vmem:[%s1209_s2 + $0x20] sm:$0xff]  ;;  %v33_v23 = vld [vmem:[%s1209_s2 + $0x28] sm:$0xff]  ;;  %vm103_vm2 = vcmask 261120  }
   0x6   :  { %v75_v12 = vsel %vm74_vm0, %v72_v7, %v73_v5  ;;  %v76_v13 = vsel %vm74_vm0, %v73_v5, %v72_v7  ;;  %v59_v19 = vsel %vm57_vm1, %v54_v10, %v53_v11  ;;  %v58_v20 = vsel %vm57_vm1, %v53_v11, %v54_v10  ;;  %v34_v25 = vld [vmem:[%s1209_s2 + $0x30] sm:$0xff]  ;;  %v35_v26 = vld [vmem:[%s1209_s2 + $0x38] sm:$0xff]  ;;  %v36_v28 = vld [vmem:[%s1209_s2 + $0x40] sm:$0xff] }
   0x7   :  { %82 = vperm.xlu0 %829, %v27_v9   ;;  %67 = vperm.xlu1 %830, %v27_v9   ;;  %v745_v21 = vpack.c.bf16 %v31_v18, %v30_v16  ;;  %v749_v24 = vpack.c.bf16 %v33_v23, %v32_v22  ;;  %v753_v27 = vpack.c.bf16 %v35_v26, %v34_v25  ;;  %v37_v29 = vld [vmem:[%s1209_s2 + $0x48] sm:$0xff]  ;;  %v38_v31 = vld [vmem:[%s1209_s2 + $0x50] sm:$0xff]  ;;  %v39_v32 = vld [vmem:[%s1209_s2 + $0x58] sm:$0xff]  ;;  %vm106_vm3 = vcmask 523264  }
   0x8   :  { %742 = vmatprep.subr.bf16.mxu1 %v741_v17  ;;  %v757_v30 = vpack.c.bf16 %v37_v29, %v36_v28  ;;  %v761_v33 = vpack.c.bf16 %v39_v32, %v38_v31  ;;  %vm113_vm4 = vcmask 785408   ;;  %v111_v50 = vsub.s32 0, %v918_v8  ;;  %v996_v51 = vld [vmem:[%s1210_s3] sm:$0xff]  ;;  %v41_v9 = vld [vmem:[%s1209_s2 + $0x68] sm:$0xff]  ;;  %v42_v10 = vld [vmem:[%s1209_s2 + $0x70] sm:$0xff] }
   0x9   :  { %744 = vmatpush3.bf16.msra.mxu1 %v741_v17  ;;  %v40_v7 = vld [vmem:[%s1209_s2 + $0x60] sm:$0xff]  ;;  %v45_v15 = vld [vmem:[%s1209_s2 + $0x88] sm:$0xff]  ;;  %v224_v23 = vsub.s32 1, %v918_v8  ;;  %v47_v25 = vld [vmem:[%s1209_s2 + $0x98] sm:$0xff] }
   0xa   :  { %746 = vmatprep.subr.bf16.mxu1 %v745_v21  ;;  %v112_v52 = vrot.slane %v996_v51, %v111_v50  ;;  %v765_v11 = vpack.c.bf16 %v41_v9, %v40_v7  ;;  %v44_v14 = vld [vmem:[%s1209_s2 + $0x80] sm:$0xff]  ;;  %v270_v9 = vsub.s32 3, %v918_v8 }
   0xb   :  { %91 = vrot.lane.b32.xlu1 %v25_v1, %s866_s11  ;;  %89 = vrot.lane.b32.xlu0 %v24_v6, %s866_s11  ;;  %v773_v16 = vpack.c.bf16 %v45_v15, %v44_v14  ;;  %v225_v28 = vrot.slane %v996_v51, %v224_v23  ;;  %v48_v29 = vld [vmem:[%s1209_s2 + $0xa0] sm:$0xff] }
   0xc   :  { %831 = vset.pattern.permute.xlu0 %v865_v4 }
   0xd   :  { %748 = vmatpush3.bf16.msra.mxu1 %v745_v21 }
   0xe   :  { %750 = vmatprep.subr.bf16.mxu1 %v749_v24 }
  0x11   :  { %752 = vmatpush3.bf16.msra.mxu1 %v749_v24  ;;  %v46_v24 = vld [vmem:[%s1209_s2 + $0x90] sm:$0xff] }
  0x12   :  { %754 = vmatprep.subr.bf16.mxu1 %v753_v27  ;;  %v777_v26 = vpack.c.bf16 %v47_v25, %v46_v24 }
  0x15   :  { %756 = vmatpush3.bf16.msra.mxu1 %v753_v27  ;;  %v230_v27 = vsub.s32 2, %v918_v8 }
  0x16   :  { %758 = vmatprep.subr.bf16.mxu1 %v757_v30 }
  0x19   :  { %760 = vmatpush3.bf16.msra.mxu1 %v757_v30  ;;  %v49_v30 = vld [vmem:[%s1209_s2 + $0xa8] sm:$0xff] }
  0x1a   :  { %762 = vmatprep.subr.bf16.mxu1 %v761_v33  ;;  %v781_v32 = vpack.c.bf16 %v49_v30, %v48_v29 }
  0x1d   :  { %764 = vmatpush3.bf16.msra.mxu1 %v761_v33 }
  0x1e   :  { %766 = vmatprep.subr.bf16.mxu1 %v765_v11 }
  0x82   :  { %v972_v34 = vpop.permute.xlu0 %78  ;;  %v980_v38 = vpop.permute.xlu1 %62 }
  0x83   :  { %v85_v35 = vmul.f32 %v972_v34, %v75_v12  ;;  %v70_v40 = vmul.f32 %v980_v38, %v59_v19  ;;  %v43_v12 = vld [vmem:[%s1209_s2 + $0x78] sm:$0xff] }
  0x85   :  { %97 = vrot.lane.b32.xlu0 %v85_v35, %s867_s28  ;;  %v231_v35 = vrot.slane %v996_v51, %v230_v27 }
  0x86   :  { %v976_v36 = vpop.permute.xlu0 %82  ;;  %v982_v39 = vpop.permute.xlu1 %67 }
  0x87   :  { %v86_v37 = vmul.f32 %v976_v36, %v76_v13  ;;  %v71_v42 = vmul.f32 %v982_v39, %v58_v20  ;;  %v769_v13 = vpack.c.bf16 %v43_v12, %v42_v10 }
  0x89   :  { %99 = vrot.lane.b32.xlu1 %v86_v37, %s867_s28 }
  0x8a   :  { %v90_v41 = vpop.permute.xlu0 %89  ;;  %v92_v43 = vpop.permute.xlu1 %91 }
  0x8b   :  { %v104_v44 = vsel %vm103_vm2, %v70_v40, %v90_v41  ;;  %v105_v47 = vsel %vm103_vm2, %v71_v42, %v92_v43  ;;  %v50_v40 = vld [vmem:[%s1209_s2 + $0xb0] sm:$0xff]  ;;  %v51_v41 = vld [vmem:[%s1209_s2 + $0xb8] sm:$0xff] }
  0x8c   :  { %v785_v43 = vpack.c.bf16 %v51_v41, %v50_v40 }
  0xf7   :  { %v98_v45 = vpop.permute.xlu0 %97 }
  0xf8   :  { %v107_v46 = vsel %vm106_vm3, %v104_v44, %v98_v45 }
  0xf9   :  { %711 = vmatprep.mubr.msk.f32.mxu1 %vm113_vm4, %v107_v46 }
  0xfb   :  { %v100_v48 = vpop.permute.xlu1 %99 }
  0xfc   :  { %v108_v49 = vsel %vm106_vm3, %v105_v47, %v100_v48 }
  0xfd   :  { %712 = vmatmul.mubr.msk.f32.vlgmr.msra.gmra.mrb[0].mxu1 %vm113_vm4, %v108_v49 }
  0xfe   :  { %768 = vmatpush3.bf16.msra.mxu1 %v765_v11 }
  0xff   :  { %770 = vmatprep.subr.bf16.mxu1 %v769_v13 }
 0x102   :  { %772 = vmatpush3.bf16.msra.mxu1 %v769_v13 }
 0x103   :  { %774 = vmatprep.subr.bf16.mxu1 %v773_v16 }
 0x106   :  { %776 = vmatpush3.bf16.msra.mxu1 %v773_v16 }
 0x107   :  { %778 = vmatprep.subr.bf16.mxu1 %v777_v26 }
 0x10a   :  { %780 = vmatpush3.bf16.msra.mxu1 %v777_v26 }
 0x10b   :  { %782 = vmatprep.subr.bf16.mxu1 %v781_v32 }
 0x10e   :  { %784 = vmatpush3.bf16.msra.mxu1 %v781_v32  ;;  %v381_v32 = vsub.s32 4, %v918_v8 }
 0x10f   :  { %786 = vmatprep.subr.bf16.mxu1 %v785_v43 }
 0x112   :  { %788 = vmatpush3.bf16.msra.mxu1 %v785_v43 }
 0x1d0   :  { %v713_v53 = vpop.f32.mrb[0].mxu1 }
 0x1d1   :  { %v192_v54 = vadd.f32 %v713_v53, %v112_v52  ;;  %v186_v55 = vpop.f32.mrb[1].mxu1 }
 0x1d2   :  { %v187_v56 = vadd.f32 %v186_v55, %v112_v52 }
 0x1d3   :  { %v198_v57 = vsel %vm103_vm2, %v192_v54, 0.0 }
 0x1d4   :  { %199 = vadd.xlane.f32.xlu1 %v198_v57  ;;  %v195_v58 = vsel %vm103_vm2, %v187_v56, 0.0 }
 0x1d5   :  { %196 = vadd.xlane.f32.xlu0 %v195_v58 }
 0x261   :  { %v200_v59 = vpop.xlane.xlu1 %199 }
 0x262   :  { %v203_v60 = vmul.f32 0.03125, %v200_v59  ;;  %v197_v61 = vpop.xlane.xlu0 %196 }
 0x263   :  { %v202_v62 = vmul.f32 0.03125, %v197_v61 }
 0x264   :  { %v205_v63 = vsub.f32 %v192_v54, %v203_v60 }
 0x265   :  { %v204_v0 = vsub.f32 %v187_v56, %v202_v62 }
 0x266   :  { %v207_v5 = vmul.f32 %v205_v63, %v205_v63 }
 0x267   :  { %v206_v1 = vmul.f32 %v204_v0, %v204_v0 }
 0x268   :  { %v211_v6 = vsel %vm103_vm2, %v207_v5, 0.0 }
 0x269   :  { %v208_v3 = vsel %vm103_vm2, %v206_v1, 0.0 }
 0x26a   :  { %209 = vadd.xlane.f32.xlu0 %v208_v3 }
 0x26e   :  { %212 = vadd.xlane.f32.xlu0 %v211_v6 }
 0x2f7   :  { %v210_v17 = vpop.xlane.xlu0 %209 }
 0x2f8   :  { %v214_v18 = vmul.f32 0.03125, %v210_v17 }
 0x2fa   :  { %v216_v19 = vadd.f32 1e-05, %v214_v18 }
 0x2fb   :  { %v213_v20 = vpop.xlane.xlu0 %212 }
 0x2fc   :  { %832 = vrsqrt.f32 %v216_v19  ;;  %v215_v21 = vmul.f32 0.03125, %v213_v20 }
 0x2fe   :  { %v217_v22 = vadd.f32 1e-05, %v215_v21 }
 0x300   :  { %834 = vrsqrt.f32 %v217_v22 }
 0x306   :  { %v833_v31 = vpop.eup %832 }
 0x307   :  { %v220_v33 = vmul.f32 %v833_v31, %v204_v0 }
 0x309   :  { %v226_v37 = vmul.f32 %v225_v28, %v220_v33  ;;  %v387_v33 = vsub.s32 5, %v918_v8 }
 0x30a   :  { %v835_v42 = vpop.eup %834 }
 0x30b   :  { %v232_v44 = vadd.f32 %v231_v35, %v226_v37  ;;  %v221_v45 = vmul.f32 %v835_v42, %v205_v63  ;;  %v388_v41 = vrot.slane %v996_v51, %v387_v33  ;;  %v395_v42 = vsub.s32 6, %v918_v8 }
 0x30d   :  { %v234_v46 = vmax.f32 %v232_v44, 0.0  ;;  %v227_v47 = vmul.f32 %v225_v28, %v221_v45 }
 0x30f   :  { %250 = vrot.lane.b32.xlu1 %v234_v46, %s866_s11  ;;  %v233_v48 = vadd.f32 %v231_v35, %v227_v47  ;;  %v236_v52 = vrot.slane %v234_v46, 7  ;;  %v242_v53 = vrot.slane %v234_v46, 1  ;;  %v382_v35 = vrot.slane %v996_v51, %v381_v32 }
 0x310   :  { %v396_v46 = vrot.slane %v996_v51, %v395_v42 }
 0x311   :  { %v235_v49 = vmax.f32 %v233_v48, 0.0 }
 0x313   :  { %252 = vrot.lane.b32.xlu0 %v235_v49, %s866_s11  ;;  %v237_v54 = vrot.slane %v235_v49, 7  ;;  %v243_v55 = vrot.slane %v235_v49, 1 }
 0x315   :  { %v244_v56 = vsel %vm74_vm0, %v242_v53, %v243_v55  ;;  %v239_v57 = vsel %vm57_vm1, %v237_v54, %v236_v52  ;;  %v238_v58 = vsel %vm57_vm1, %v236_v52, %v237_v54  ;;  %v245_v60 = vsel %vm74_vm0, %v243_v55, %v242_v53 }
 0x316   :  { %v246_v59 = vmul.f32 %v244_v56, %v972_v34  ;;  %v247_v61 = vmul.f32 %v245_v60, %v976_v36  ;;  %v240_v63 = vmul.f32 %v239_v57, %v980_v38  ;;  %v241_v34 = vmul.f32 %v238_v58, %v982_v39 }
 0x317   :  { %v271_v38 = vrot.slane %v996_v51, %v270_v9  ;;  %v407_v58 = vsub.s32 7, %v918_v8 }
 0x318   :  { %258 = vrot.lane.b32.xlu1 %v246_v59, %s867_s28 }
 0x319   :  { %v408_v59 = vrot.slane %v996_v51, %v407_v58  ;;  %v484_v51 = vld [vmem:[%s1212_s5] sm:$0xff] }
 0x31c   :  { %260 = vrot.lane.b32.xlu1 %v247_v61, %s867_s28 }
 0x381   :  { %v251_v62 = vpop.permute.xlu1 %250 }
 0x382   :  { %v264_v0 = vsel %vm103_vm2, %v240_v63, %v251_v62 }
 0x385   :  { %v253_v3 = vpop.permute.xlu0 %252 }
 0x386   :  { %v265_v6 = vsel %vm103_vm2, %v241_v34, %v253_v3  ;;  %v500_v3 = vld [vmem:[%s1212_s5 + $0x80] sm:$0xff] }
 0x38a   :  { %v259_v1 = vpop.permute.xlu1 %258 }
 0x38b   :  { %v266_v5 = vsel %vm106_vm3, %v264_v0, %v259_v1 }
 0x38c   :  { %738 = vmatprep.mubr.msk.f32.mxu1 %vm113_vm4, %v266_v5  ;;  %v501_v5 = vld [vmem:[%s1212_s5 + $0x88] sm:$0xff] }
 0x38d   :  { %v789_v34 = vpack.c.bf16 %v501_v5, %v500_v3  ;;  %v498_v5 = vld [vmem:[%s1212_s5 + $0x70] sm:$0xff] }
 0x38e   :  { %v261_v7 = vpop.permute.xlu1 %260 }
 0x38f   :  { %v267_v36 = vsel %vm106_vm3, %v265_v6, %v261_v7  ;;  %v485_v6 = vld [vmem:[%s1212_s5 + $0x8] sm:$0xff]  ;;  %v502_v7 = vld [vmem:[%s1212_s5 + $0x90] sm:$0xff]  ;;  %790 = vmatprep.subr.bf16.mxu0 %v789_v34 }
 0x390   :  { %739 = vmatmul.mubr.msk.f32.vlgmr.msra.gmra.mrb[2].mxu1 %vm113_vm4, %v267_v36  ;;  %v503_v36 = vld [vmem:[%s1212_s5 + $0x98] sm:$0xff]  ;;  %v791_v9 = vpack.c.bf16 %v485_v6, %v484_v51  ;;  %v470_v6 = vand.u32 127, %v55_v2 }
 0x391   :  { %v499_v51 = vld [vmem:[%s1212_s5 + $0x78] sm:$0xff] }
 0x392   :  { %792 = vmatpush3.bf16.msra.mxu0 %v791_v9  ;;  %v819_v34 = vpack.c.bf16 %v499_v51, %v498_v5 }
 0x463   :  { %v740_v10 = vpop.f32.mrb[2].mxu1 }
 0x464   :  { %v350_v11 = vadd.f32 %v740_v10, %v271_v38  ;;  %v344_v12 = vpop.f32.mrb[3].mxu1  ;;  %v486_v10 = vld [vmem:[%s1212_s5 + $0x10] sm:$0xff] }
 0x465   :  { %v345_v13 = vadd.f32 %v344_v12, %v271_v38  ;;  %v793_v38 = vpack.c.bf16 %v503_v36, %v502_v7  ;;  %v504_v12 = vld [vmem:[%s1212_s5 + $0xa0] sm:$0xff] }
 0x466   :  { %v356_v14 = vsel %vm103_vm2, %v350_v11, 0.0 }
 0x467   :  { %357 = vadd.xlane.f32.xlu1 %v356_v14  ;;  %v353_v39 = vsel %vm103_vm2, %v345_v13, 0.0  ;;  %794 = vmatprep.subr.bf16.mxu0 %v793_v38 }
 0x468   :  { %354 = vadd.xlane.f32.xlu0 %v353_v39 }
 0x4f4   :  { %v358_v15 = vpop.xlane.xlu1 %357 }
 0x4f5   :  { %v360_v16 = vmul.f32 0.03125, %v358_v15  ;;  %v355_v17 = vpop.xlane.xlu0 %354  ;;  %v488_v15 = vld [vmem:[%s1212_s5 + $0x20] sm:$0xff] }
 0x4f6   :  { %v359_v18 = vmul.f32 0.03125, %v355_v17  ;;  %v506_v17 = vld [vmem:[%s1212_s5 + $0xb0] sm:$0xff] }
 0x4f7   :  { %v362_v19 = vsub.f32 %v350_v11, %v360_v16  ;;  %v487_v11 = vld [vmem:[%s1212_s5 + $0x18] sm:$0xff]  ;;  %v489_v16 = vld [vmem:[%s1212_s5 + $0x28] sm:$0xff] }
 0x4f8   :  { %v361_v20 = vsub.f32 %v345_v13, %v359_v18  ;;  %v505_v13 = vld [vmem:[%s1212_s5 + $0xa8] sm:$0xff]  ;;  %v795_v14 = vpack.c.bf16 %v487_v11, %v486_v10  ;;  %v507_v18 = vld [vmem:[%s1212_s5 + $0xb8] sm:$0xff]  ;;  %v471_v11 = vadd.s32 128, %v470_v6 }
 0x4f9   :  { %v364_v24 = vmul.f32 %v362_v19, %v362_v19  ;;  %v797_v39 = vpack.c.bf16 %v505_v13, %v504_v12 }
 0x4fa   :  { %v363_v21 = vmul.f32 %v361_v20, %v361_v20  ;;  %796 = vmatpush3.bf16.msra.mxu0 %v795_v14 }
 0x4fb   :  { %v368_v25 = vsel %vm103_vm2, %v364_v24, 0.0  ;;  %798 = vmatprep.subr.bf16.mxu0 %v797_v39  ;;  %v508_v24 = vld [vmem:[%s1212_s5 + $0xc0] sm:$0xff] }
 0x4fc   :  { %v365_v22 = vsel %vm103_vm2, %v363_v21, 0.0  ;;  %v490_v21 = vld [vmem:[%s1212_s5 + $0x30] sm:$0xff] }
 0x4fd   :  { %366 = vadd.xlane.f32.xlu0 %v365_v22  ;;  %v491_v22 = vld [vmem:[%s1212_s5 + $0x38] sm:$0xff] }
 0x501   :  { %369 = vadd.xlane.f32.xlu0 %v368_v25  ;;  %v509_v25 = vld [vmem:[%s1212_s5 + $0xc8] sm:$0xff] }
 0x58a   :  { %v367_v26 = vpop.xlane.xlu0 %366 }
 0x58b   :  { %v371_v27 = vmul.f32 0.03125, %v367_v26  ;;  %v803_v26 = vpack.c.bf16 %v491_v22, %v490_v21 }
 0x58d   :  { %v373_v28 = vadd.f32 1e-05, %v371_v27  ;;  %v805_v27 = vpack.c.bf16 %v509_v25, %v508_v24 }
 0x58e   :  { %v370_v29 = vpop.xlane.xlu0 %369 }
 0x58f   :  { %836 = vrsqrt.f32 %v373_v28  ;;  %v372_v30 = vmul.f32 0.03125, %v370_v29  ;;  %v492_v28 = vld [vmem:[%s1212_s5 + $0x40] sm:$0xff]  ;;  %v493_v29 = vld [vmem:[%s1212_s5 + $0x48] sm:$0xff] }
 0x590   :  { %v807_v32 = vpack.c.bf16 %v493_v29, %v492_v28 }
 0x591   :  { %v374_v31 = vadd.f32 1e-05, %v372_v30  ;;  %v510_v30 = vld [vmem:[%s1212_s5 + $0xd0] sm:$0xff] }
 0x593   :  { %838 = vrsqrt.f32 %v374_v31  ;;  %v511_v31 = vld [vmem:[%s1212_s5 + $0xd8] sm:$0xff] }
 0x594   :  { %v809_v33 = vpack.c.bf16 %v511_v31, %v510_v30 }
 0x599   :  { %v837_v37 = vpop.eup %836 }
 0x59a   :  { %v377_v40 = vmul.f32 %v837_v37, %v361_v20  ;;  %v801_v20 = vpack.c.bf16 %v507_v18, %v506_v17  ;;  %v495_v37 = vld [vmem:[%s1212_s5 + $0x58] sm:$0xff] }
 0x59c   :  { %v383_v43 = vmul.f32 %v382_v35, %v377_v40 }
 0x59d   :  { %v839_v44 = vpop.eup %838 }
 0x59e   :  { %v389_v45 = vadd.f32 %v388_v41, %v383_v43  ;;  %v378_v47 = vmul.f32 %v839_v44, %v362_v19  ;;  %v799_v19 = vpack.c.bf16 %v489_v16, %v488_v15  ;;  %v868_v15 = vmov 1.0  }
 0x5a0   :  { %v391_v48 = vmax.f32 %v389_v45, 0.0  ;;  %v384_v49 = vmul.f32 %v382_v35, %v378_v47  ;;  %800 = vmatpush3.bf16.msra.mxu0 %v799_v19  ;;  %v494_v35 = vld [vmem:[%s1212_s5 + $0x50] sm:$0xff] }
 0x5a1   :  { %802 = vmatprep.subr.bf16.mxu0 %v801_v20  ;;  %v811_v40 = vpack.c.bf16 %v495_v37, %v494_v35 }
 0x5a2   :  { %v397_v52 = vmul.f32 %v396_v46, %v391_v48  ;;  %v390_v53 = vadd.f32 %v388_v41, %v384_v49  ;;  %v413_v41 = vld [vmem:[%s1211_s4] sm:$0x3] }
 0x5a3   :  { %v418_v42 = vrot.slane %v413_v41, %v111_v50  ;;  %v422_v43 = vrot.slane %v413_v41, %v224_v23 }
 0x5a4   :  { %v399_v54 = vsel %vm103_vm2, %v397_v52, 0.0  ;;  %v392_v55 = vmax.f32 %v390_v53, 0.0  ;;  %804 = vmatpush3.bf16.msra.mxu0 %v803_v26 }
 0x5a5   :  { %400 = vadd.xlane.f32.xlu1 %v399_v54  ;;  %806 = vmatprep.subr.bf16.mxu0 %v805_v27 }
 0x5a6   :  { %v398_v56 = vmul.f32 %v396_v46, %v392_v55 }
 0x5a8   :  { %v402_v57 = vsel %vm103_vm2, %v398_v56, 0.0  ;;  %808 = vmatpush3.bf16.msra.mxu0 %v807_v32 }
 0x5a9   :  { %403 = vadd.xlane.f32.xlu0 %v402_v57  ;;  %810 = vmatprep.subr.bf16.mxu0 %v809_v33 }
 0x5ac   :  { %812 = vmatpush3.bf16.msra.mxu0 %v811_v40 }
 0x632   :  { %v401_v60 = vpop.xlane.xlu1 %400 }
 0x633   :  { %v409_v61 = vadd.f32 %v408_v59, %v401_v60  ;;  %v513_v60 = vld [vmem:[%s1212_s5 + $0xe8] sm:$0xff] }
 0x635   :  { %v411_v62 = vmax.f32 %v409_v61, 0.0  ;;  %v496_v61 = vld [vmem:[%s1212_s5 + $0x60] sm:$0xff] }
 0x636   :  { %v404_v63 = vpop.xlane.xlu0 %403 }
 0x637   :  { %v410_v0 = vadd.f32 %v408_v59, %v404_v63  ;;  %427 = vperm.xlu1 %830, %v411_v62   ;;  %v512_v59 = vld [vmem:[%s1212_s5 + $0xe0] sm:$0xff]  ;;  %v497_v62 = vld [vmem:[%s1212_s5 + $0x68] sm:$0xff] }
 0x638   :  { %v815_v63 = vpack.c.bf16 %v497_v62, %v496_v61 }
 0x639   :  { %v412_v1 = vmax.f32 %v410_v0, 0.0  ;;  %v514_v0 = vld [vmem:[%s1212_s5 + $0xf0] sm:$0xff] }
 0x63b   :  { %432 = vperm.xlu0 %831, %v412_v1   ;;  %v515_v1 = vld [vmem:[%s1212_s5 + $0xf8] sm:$0xff]  ;;  %s869_s5 = smov [#allocation2]  }
 0x63c   :  { %v817_v3 = vpack.c.bf16 %v515_v1, %v514_v0  ;;  %s598_s9 = sshll.u32 %s869_s5, 4  ;;  %s599_s9 = int_to_ptr.vmem [resolvable:$true] %s598_s9 }
 0x63d   :  { %s840_s10 = scalar_lea.vmem %s599_s9, 256  ;;  %p845_p1 = scmp.lt.s32.totalorder %s599_s9, %s599_s9 }
 0x63e   :  { %p841_p0 = scmp.ne.s32.totalorder %s599_s9, %s840_s10  ;;  %p846_p2 = scmp.lt.s32.totalorder %s840_s10, %s840_s10 }
 0x640   :  { %p847_p3 = por %p846_p2, %p845_p1 }
 0x642   :  { %p848_p4 = pnand %p847_p3, %p841_p0 }
 0x6b6   :  { %v428_v44 = vpop.permute.xlu1 %427 }
 0x6b7   :  { %vm435_vm5 = vcmp.lt.f32.partialorder %v418_v42, %v428_v44  ;;  %vm436_vm6 = vcmp.lt.f32.partialorder %v422_v43, %v428_v44 }
 0x6b8   :  { %v439_v45 = vsel %vm435_vm5, 1, %v865_v4  ;;  %v440_v46 = vsel %vm436_vm6, 1, %v865_v4 }
 0x6b9   :  { %v443_v47 = vadd.s32 %v440_v46, %v439_v45 }
 0x6ba   :  { %v433_v48 = vpop.permute.xlu0 %432 }
 0x6bb   :  { %vm437_vm7 = vcmp.lt.f32.partialorder %v418_v42, %v433_v48  ;;  %vm438_vm8 = vcmp.lt.f32.partialorder %v422_v43, %v433_v48  ;;  %v445_v49 = vshrl.u32 %v443_v47, 16  ;;  %v444_v52 = vand.u32 65535, %v443_v47 }
 0x6bc   :  { %v441_v53 = vsel %vm437_vm7, 1, %v865_v4  ;;  %v442_v50 = vsel %vm438_vm8, 1, %v865_v4  ;;  %v813_v4 = vpack.c.bf16 %v513_v60, %v512_v59 }
 0x6bd   :  { %v456_v54 = vadd.s32 %v442_v50, %v441_v53  ;;  %v447_v8 = vcvt.s32.f32 %v445_v49  ;;  %v446_v23 = vcvt.s32.f32 %v444_v52 }
 0x6be   :  { %814 = vmatprep.subr.bf16.mxu0 %v813_v4 }
 0x6bf   :  { %450 = vadd.xlane.f32.xlu1 %v447_v8  ;;  %448 = vadd.xlane.f32.xlu0 %v446_v23  ;;  %v458_v55 = vshrl.u32 %v456_v54, 16  ;;  %v457_v57 = vand.u32 65535, %v456_v54 }
 0x6c0   :  { %816 = vmatpush3.bf16.msra.mxu0 %v815_v63 }
 0x6c1   :  { %v460_v56 = vcvt.s32.f32 %v458_v55  ;;  %v459_v58 = vcvt.s32.f32 %v457_v57  ;;  %818 = vmatprep.subr.bf16.mxu0 %v817_v3 }
 0x6c3   :  { %463 = vadd.xlane.f32.xlu1 %v460_v56 }
 0x6c4   :  { %820 = vmatpush3.bf16.msra.mxu0 %v819_v34 }
 0x6c7   :  { %461 = vadd.xlane.f32.xlu1 %v459_v58 }
 0x74c   :  { %v451_v7 = vpop.xlane.xlu1 %450  ;;  %v449_v36 = vpop.xlane.xlu0 %448 }
 0x74d   :  { %v453_v9 = vcvt.f32.s32 %v451_v7  ;;  %v452_v10 = vcvt.f32.s32 %v449_v36 }
 0x74f   :  { %v454_v38 = vshll.u32 %v453_v9, 16 }
 0x750   :  { %v464_v12 = vpop.xlane.xlu1 %463 }
 0x751   :  { %v455_v13 = vadd.s32 %v454_v38, %v452_v10  ;;  %v466_v14 = vcvt.f32.s32 %v464_v12 }
 0x753   :  { %vm473_vm9 = vcmp.eq.s32.totalorder %v471_v11, %v455_v13  ;;  %vm472_vm10 = vcmp.eq.s32.totalorder %v470_v6, %v455_v13  ;;  %v467_v16 = vshll.u32 %v466_v14, 16 }
 0x754   :  { %v462_v39 = vpop.xlane.xlu1 %461  ;;  %617 = vmatprep.mubr.msk.f32.mxu0 %vm473_vm9, %v868_v15 }
 0x755   :  { %v465_v17 = vcvt.f32.s32 %v462_v39  ;;  %618 = vmatmul.mubr.msk.f32.vlgmr.msra.gmra.mrb[0].mxu0 %vm472_vm10, %v868_v15 }
 0x757   :  { %v468_v18 = vadd.s32 %v467_v16, %v465_v17 }
 0x759   :  { %vm475_vm11 = vcmp.eq.s32.totalorder %v471_v11, %v468_v18  ;;  %vm474_vm12 = vcmp.eq.s32.totalorder %v470_v6, %v468_v18 }
 0x75a   :  { %619 = vmatprep.mubr.msk.f32.mxu0 %vm475_vm11, %v868_v15 }
 0x75b   :  { %620 = vmatmul.mubr.msk.f32.gmra.mrb[2].mxu0 %vm474_vm12, %v868_v15 }
 0x828   :  { %v681_v2 = vpop.f32.mrb[0].mxu0 }
 0x829   :  { %v682_v19 = vpop.f32.mrb[1].mxu0 }
 0x82a   :  { %v683_v20 = vadd.f32 %v682_v19, %v681_v2 }
 0x82c   :  { %591 = vst.msk [vmem:[#allocation2] sm:$0xff] %vm103_vm2, %v683_v20 }
 0x82e   :  { %v684_v21 = vpop.f32.mrb[2].mxu0 }
 0x82f   :  { %v685_v22 = vpop.f32.mrb[3].mxu0 }
 0x830   :  { %v686_v24 = vadd.f32 %v685_v22, %v684_v21 }
 0x832   :  { %592 = vst.msk [vmem:[#allocation2 + $0x8] sm:$0xff] %vm103_vm2, %v686_v24 }
 0x833   :  { %851 = shalt.err (!%p848_p4)
}
 0x834   :  { %s852_s14 = scalar_lea.hbm %s1213_s6, 256 }
 0x835   :  { %p853_p5 = scmp.ne.s32.totalorder %s1213_s6, %s852_s14  ;;  %p856_p6 = scmp.lt.u32.totalorder %s852_s14, %s1213_s6 }
 0x837   :  { %p858_p7 = pnand %p856_p6, %p853_p5 }
 0x839   :  { %861 = shalt.err (!%p858_p7)
}
 0x83a   :  { %s870_s19 = smov 128   ;;  %s871_s20 = smov 8  }
 0x83b   :  { %604 = dma.vmem_to_hbm [thread:$0]  %s599_s9, 256, %s1213_s6, [#allocation3], %s870_s19, %s870_s19, %s871_s20  }
 0x83c   :  { %862 = dma.done.wait [#allocation3], 256  }
 0x83d   :  { %863 = vsyncadd [#allocation3], 4294967040 }
 0x83e   :  { %608 = vsyncpa [#allocation3], 1 }

</bundles_post_ra>
